<compile_context>
chip_gen: v6e
topology: v6e:2x2x1
jax: 0.10.0
libtpu: 0.0.40
codegen_flags: <defaults>
</compile_context>

<pallas_src>
import functools

import jax
import jax.numpy as jnp
from jax import lax
from jax.experimental import pallas as pl
from jax.experimental.pallas import tpu as pltpu


# --------------------------------------------------------------------------
# Tile selection helpers
# --------------------------------------------------------------------------
def _pick_tile(n, candidates):
    for c in candidates:
        if c <= n and n % c == 0:
            return c
    return n


def _pick_batch_tile(B):
    tb = _pick_tile(B, (512, 384, 256, 128, 64, 32, 16, 8))
    # v7x megacore: prefer >=2 batch tiles (so the "parallel" batch axis can be
    # sharded across both TensorCores) once B is big enough to keep the MXU fed.
    if B // tb < 2 and B >= 256:
        for c in (256, 128):
            if c < B and B % c == 0:
                return c
    return tb


def _pick_time_tile(T, tb, N, xwi_itemsize, slab_budget=8 << 20):
    # Largest divisor of T (<=32) whose double-buffered xwi slab fits the budget.
    for tt in (32, 16, 8, 4, 2, 1):
        if tt <= T and T % tt == 0 and 2 * tt * tb * N * xwi_itemsize <= slab_budget:
            return tt
    return 1


# --------------------------------------------------------------------------
# Kernel 1: hoisted input projection for the whole sequence:
#   y = x @ Wi + (bi + bh), row/col-tiled matmul, f32 accumulation,
#   output stored in xwi_dtype (bf16 by default).
# --------------------------------------------------------------------------
def _i2h_kernel(x_ref, wi_ref, b_ref, y_ref):
    acc = jnp.dot(x_ref[...], wi_ref[...], preferred_element_type=jnp.float32)
    y_ref[...] = (acc + b_ref[...]).astype(y_ref.dtype)


def _i2h_project(x_flat, wi, bias, out_dtype):
    M, D = x_flat.shape
    N = wi.shape[-1]
    tm = _pick_tile(M, (512, 256, 128, 64, 32, 16, 8))
    tn = _pick_tile(N, (2048, 1024, 512, 256, 128))

    # Explicit VMEM budget (double-buffered x / wi / bias / out blocks).
    need = (2 * tm * D * x_flat.dtype.itemsize
            + 2 * D * tn * wi.dtype.itemsize
            + 2 * tn * 4
            + 2 * tm * tn * jnp.dtype(out_dtype).itemsize)
    vmem_limit = int(min(max(2 * need, 16 << 20), 64 << 20))

    return pl.pallas_call(
        _i2h_kernel,
        out_shape=jax.ShapeDtypeStruct((M, N), out_dtype),
        grid_spec=pltpu.PrefetchScalarGridSpec(
            num_scalar_prefetch=0,
            grid=(M // tm, N // tn),
            in_specs=[
                pl.BlockSpec((tm, D), lambda i, j: (i, 0)),
                pl.BlockSpec((D, tn), lambda i, j: (0, j)),   # col-tiled weight
                pl.BlockSpec((1, tn), lambda i, j: (0, j)),   # fused bias (bi + bh)
            ],
            out_specs=pl.BlockSpec((tm, tn), lambda i, j: (i, j)),
        ),
        compiler_params=pltpu.CompilerParams(
            dimension_semantics=("parallel", "parallel"),
            vmem_limit_bytes=vmem_limit),
    )(x_flat, wi, bias)


# --------------------------------------------------------------------------
# Kernel 2: recurrent LSTM steps. grid=(B//tb, T//Tt); Tt time steps are run
# per grid step in an unrolled in-kernel loop; h/c live in f32 VMEM scratch
# across time blocks; h2h weight is VMEM-resident (constant index_map).
# --------------------------------------------------------------------------
def _reslstm_seq_kernel(xwi_ref, h0_ref, c0_ref, wh_ref,
                        hseq_ref, c_last_ref, h_scr, c_scr):
    tblk = pl.program_id(1)
    n_tblk = pl.num_programs(1)
    R = h0_ref.shape[-1]
    Tt = xwi_ref.shape[0]

    @pl.when(tblk == 0)
    def _init():
        h_scr[...] = h0_ref[...].astype(jnp.float32)
        c_scr[...] = c0_ref[...].astype(jnp.float32)

    wh = wh_ref[...]   # resident recurrent weight

    def step(tt, carry):
        h, c = carry
        # Per-step work: xWi (+ fused bias) was precomputed; only the small h2h
        # matmul + gate math remain in the recurrence. bf16 operands, f32 acc.
        input_sum = xwi_ref[tt].astype(jnp.float32) + jnp.dot(
            h.astype(wh.dtype), wh, preferred_element_type=jnp.float32)

        # Single wide sigmoid over the first 3R columns, then slice.
        # NOTE: for lane-dense (unmasked) slices/stores, keep R a multiple of 128
        # in production configs; R=32 in the demo is functionally fine.
        sig = jax.nn.sigmoid(input_sum[:, : 3 * R])
        in_gate = sig[:, 0:R]
        out_gate = sig[:, R:2 * R]
        forget_gate = sig[:, 2 * R:3 * R]
        in_transform = input_sum[:, 3 * R:4 * R]   # no tanh, per the module

        next_c = forget_gate * c + in_gate * in_transform
        next_h = out_gate * jnp.tanh(next_c)

        # Eval-mode dropout is identity: output == next_h, stored once. The
        # wrapper returns this array for both "output" and "next_h".
        # TODO(synk): training-mode dropout would need pltpu.prng_seed /
        # pltpu.prng_random_bits + masking here.
        hseq_ref[tt] = next_h.astype(hseq_ref.dtype)
        return next_h, next_c

    # Unrolled in-kernel time loop: amortizes per-grid-step pipeline overhead
    # and lets the scheduler overlap EUP/VPU gate math of step t with the DMA
    # of the next xwi slab.
    h, c = lax.fori_loop(0, Tt, step, (h_scr[...], c_scr[...]), unroll=True)
    h_scr[...] = h
    c_scr[...] = c

    @pl.when(tblk == n_tblk - 1)
    def _final():
        c_last_ref[...] = c                # cell state kept in float32


def reslstm_sequence(x_seq, h0, c0, wi, bi, wh, bh,
                     param_dtype=jnp.bfloat16, xwi_dtype=None):
    """Run T ResLSTM steps with the (blocked) time loop inside the kernel.

    x_seq: (T, B, D); h0/c0: (B, R); wi: (D, 4R); wh: (R, 4R); bi/bh: (1, 4R).
    Weights are pre-transposed so the kernel does x @ Wi / h @ Wh (matches
    nn.Linear y = x @ W.T + b).

    Returns (hseq (T,B,R) in x_seq.dtype, c_last (B,R) float32). The final
    hidden state is hseq[-1] (no separate output, saves a writeback stream).

    param_dtype (default bf16) casts matmul operands only; accumulation, gate
    math and the h/c carry stay float32. xwi_dtype (default = param_dtype)
    controls the storage dtype of the hoisted xWi intermediate (the dominant
    HBM stream of the recurrence). Pass param_dtype=None for a pure-f32 path.
    """
    T, B, D = x_seq.shape
    R = h0.shape[-1]
    N = 4 * R
    out_dtype = x_seq.dtype

    if xwi_dtype is None:
        xwi_dtype = param_dtype if param_dtype is not None else jnp.float32

    # Fold the two biases once (bi + bh), applied in the hoisted projection.
    bias = (bi.astype(jnp.float32) + bh.astype(jnp.float32)).reshape(1, N)

    if param_dtype is not None:
        x_mm = x_seq.astype(param_dtype)
        wi_mm = wi.astype(param_dtype)
        wh_mm = wh.astype(param_dtype)
    else:
        x_mm, wi_mm, wh_mm = x_seq, wi, wh

    # Hoisted i2h projection over the whole sequence (one big matmul).
    xwi = _i2h_project(x_mm.reshape(T * B, D), wi_mm, bias,
                       out_dtype=xwi_dtype).reshape(T, B, N)

    tb = _pick_batch_tile(B)
    Tt = _pick_time_tile(T, tb, N, jnp.dtype(xwi_dtype).itemsize)

    # Explicit VMEM budget: resident Wh + double-buffered xwi/hseq blocks +
    # h0/c0/c_last blocks + f32 carry scratch. Clamped to the v7x 64 MiB cap.
    itm = lambda d: jnp.dtype(d).itemsize
    need = (2 * R * N * itm(wh_mm.dtype)
            + 2 * Tt * tb * N * itm(xwi_dtype)
            + 2 * Tt * tb * R * itm(out_dtype)
            + 2 * 2 * tb * R * itm(h0.dtype)
            + 2 * tb * R * 4
            + 2 * tb * R * 4)
    vmem_limit = int(min(max(2 * need, 16 << 20), 64 << 20))

    hseq, c_last = pl.pallas_call(
        _reslstm_seq_kernel,
        out_shape=(
            jax.ShapeDtypeStruct((T, B, R), out_dtype),   # per-step output / next_h
            jax.ShapeDtypeStruct((B, R), jnp.float32),    # final c (float32)
        ),
        grid_spec=pltpu.PrefetchScalarGridSpec(
            num_scalar_prefetch=0,
            grid=(B // tb, T // Tt),           # batch outer (parallel), time inner
            in_specs=[
                pl.BlockSpec((Tt, tb, N), lambda b, t: (t, b, 0)),  # xWi + bias
                pl.BlockSpec((tb, R), lambda b, t: (b, 0)),         # h0
                pl.BlockSpec((tb, R), lambda b, t: (b, 0)),         # c0
                pl.BlockSpec((R, N), lambda b, t: (0, 0)),          # Wh resident
            ],
            out_specs=[
                pl.BlockSpec((Tt, tb, R), lambda b, t: (t, b, 0)),
                pl.BlockSpec((tb, R), lambda b, t: (b, 0)),
            ],
            scratch_shapes=[
                pltpu.VMEM((tb, R), jnp.float32),   # h carry
                pltpu.VMEM((tb, R), jnp.float32),   # c carry
            ],
        ),
        compiler_params=pltpu.CompilerParams(
            dimension_semantics=("parallel", "arbitrary"),
            vmem_limit_bytes=vmem_limit),
    )(xwi, h0, c0, wh_mm)

    return hseq, c_last


def reslstm_forward(x, state, wi, bi, wh, bh, param_dtype=jnp.bfloat16):
    """Single-step API mirroring ResLSTM.forward(input_var, state).

    x: (B, D); state = (h_stack (L,B,R), c_stack (L,B,R)).
    Returns (output, (next_h[None], next_c[None])).
    """
    h_prev = state[0][-1]
    c_prev = state[1][-1]
    hseq, c_last = reslstm_sequence(x[None], h_prev, c_prev, wi, bi, wh, bh,
                                    param_dtype=param_dtype)
    output = hseq[0]   # dropout(next_h) == next_h at inference; single store reused
    return output, (hseq[-1][None], c_last[None])


if __name__ == "__main__":
    T, B, D, R = 8, 8, 32, 32        # seq, batch, input_size, rnn_size
    dtype = jnp.float32

    key = jax.random.PRNGKey(0)
    kx, kh, kc, kwi, kbi, kwh, kbh = jax.random.split(key, 7)

    x_seq = jax.random.normal(kx, (T, B, D), dtype)
    h0 = jax.random.normal(kh, (B, R), dtype)
    c0 = jax.random.normal(kc, (B, R), dtype)

    # nn.Linear(D, 4R) / nn.Linear(R, 4R) params, stored pre-transposed.
    bound_i = 1.0 / jnp.sqrt(D)
    bound_h = 1.0 / jnp.sqrt(R)
    wi = jax.random.uniform(kwi, (D, 4 * R), dtype, -bound_i, bound_i)
    bi = jax.random.uniform(kbi, (1, 4 * R), dtype, -bound_i, bound_i)
    wh = jax.random.uniform(kwh, (R, 4 * R), dtype, -bound_h, bound_h)
    bh = jax.random.uniform(kbh, (1, 4 * R), dtype, -bound_h, bound_h)

    # Pure-JAX reference: scan of the module's per-step math (float32).
    def ref_step(carry, xt):
        h, c = carry
        s = xt @ wi + bi + h @ wh + bh
        sig = jax.nn.sigmoid(s[:, :3 * R])
        in_g, out_g, f_g = sig[:, :R], sig[:, R:2 * R], sig[:, 2 * R:3 * R]
        it = s[:, 3 * R:]
        nc = f_g * c + in_g * it
        nh = out_g * jnp.tanh(nc)
        return (nh, nc), nh

    (ref_h, ref_c), ref_hs = jax.lax.scan(ref_step, (h0, c0), x_seq)

    # 1) Pure-f32 path: exact semantics check against the reference.
    seq_f32 = jax.jit(functools.partial(reslstm_sequence, param_dtype=None))
    hseq32, c_last32 = seq_f32(x_seq, h0, c0, wi, bi, wh, bh)
    jax.block_until_ready((hseq32, c_last32))
    assert jnp.allclose(hseq32, ref_hs, atol=1e-4, rtol=1e-4)
    assert jnp.allclose(hseq32[-1], ref_h, atol=1e-4, rtol=1e-4)
    assert jnp.allclose(c_last32, ref_c, atol=1e-4, rtol=1e-4)

    # 2) Default optimized path (bf16 matmul operands + bf16 xwi intermediate).
    hseq, c_last = jax.jit(reslstm_sequence)(x_seq, h0, c0, wi, bi, wh, bh)
    jax.block_until_ready((hseq, c_last))
    assert hseq.shape == (T, B, R) and c_last.shape == (B, R)
    assert jnp.allclose(hseq, ref_hs, atol=5e-2, rtol=5e-2)
    assert jnp.allclose(hseq[-1], ref_h, atol=5e-2, rtol=5e-2)
    assert jnp.allclose(c_last, ref_c, atol=5e-2, rtol=5e-2)

    # 3) Single-step API mirroring the PyTorch module signature.
    state0 = (h0[None], c0[None])
    out1, (h1, c1) = jax.jit(reslstm_forward)(x_seq[0], state0, wi, bi, wh, bh)
    jax.block_until_ready((out1, h1, c1))
    assert jnp.allclose(out1, ref_hs[0], atol=5e-2, rtol=5e-2)
    assert h1.shape == (1, B, R) and c1.shape == (1, B, R)

    print("KERNEL_OK")
</pallas_src>

<mosaic_0001>
module attributes {stable_mosaic.version = 11 : i64} {
  func.func @_i2h_kernel(%arg0: i32, %arg1: i32, %arg2: memref<64x32xf32, #tpu.memory_space<vmem>>, %arg3: memref<32x128xf32, #tpu.memory_space<vmem>>, %arg4: memref<1x128xf32, #tpu.memory_space<vmem>>, %arg5: memref<64x128xf32, #tpu.memory_space<vmem>>) attributes {dimension_semantics = [#tpu.dimension_semantics<parallel>, #tpu.dimension_semantics<parallel>], iteration_bounds = array<i64: 1, 1>, scalar_prefetch = 0 : i64, scratch_operands = 0 : i64, tpu.core_type = #tpu.core_type<tc>, window_params = [{transform_indices = @transform_0, window_bounds = array<i64: 64, 32>}, {transform_indices = @transform_1, window_bounds = array<i64: 32, 128>}, {transform_indices = @transform_2, window_bounds = array<i64: 1, 128>}, {transform_indices = @transform_3, window_bounds = array<i64: 64, 128>}]} {
    %c0 = arith.constant 0 : index
    %c0_0 = arith.constant 0 : index
    %0 = vector.load %arg2[%c0, %c0_0] : memref<64x32xf32, #tpu.memory_space<vmem>>, vector<64x32xf32>
    %c0_1 = arith.constant 0 : index
    %c0_2 = arith.constant 0 : index
    %1 = vector.load %arg3[%c0_1, %c0_2] : memref<32x128xf32, #tpu.memory_space<vmem>>, vector<32x128xf32>
    %cst = arith.constant dense<0.000000e+00> : vector<64x128xf32>
    %2 = tpu.matmul %0, %1, %cst {dimension_numbers = #tpu.dot_dimension_numbers<[1], [0], [0], [1], [0, 0, 1, 1], [], []>} : vector<64x32xf32>, vector<32x128xf32>, vector<64x128xf32> -> vector<64x128xf32>
    %c0_3 = arith.constant 0 : index
    %c0_4 = arith.constant 0 : index
    %3 = vector.load %arg4[%c0_3, %c0_4] : memref<1x128xf32, #tpu.memory_space<vmem>>, vector<1x128xf32>
    %4 = vector.broadcast %3 : vector<1x128xf32> to vector<64x128xf32>
    %5 = arith.addf %2, %4 : vector<64x128xf32>
    %c0_5 = arith.constant 0 : index
    %c0_6 = arith.constant 0 : index
    %6 = vector.load %arg5[%c0_5, %c0_6] : memref<64x128xf32, #tpu.memory_space<vmem>>, vector<64x128xf32>
    tpu.vector_store %arg5[%c0_5, %c0_6], %5 {strides = array<i32>} : memref<64x128xf32, #tpu.memory_space<vmem>>, vector<64x128xf32>,
    return
  }
  func.func @transform_0(%arg0: i32, %arg1: i32) -> (i32, i32) {
    %c0_i32 = arith.constant 0 : i32
    %c0_i32_0 = arith.constant 0 : i32
    return %arg0, %c0_i32 : i32, i32
  }
  func.func @transform_1(%arg0: i32, %arg1: i32) -> (i32, i32) {
    %c0_i32 = arith.constant 0 : i32
    %c0_i32_0 = arith.constant 0 : i32
    return %c0_i32, %arg1 : i32, i32
  }
  func.func @transform_2(%arg0: i32, %arg1: i32) -> (i32, i32) {
    %c0_i32 = arith.constant 0 : i32
    %c0_i32_0 = arith.constant 0 : i32
    return %c0_i32, %arg1 : i32, i32
  }
  func.func @transform_3(%arg0: i32, %arg1: i32) -> (i32, i32) {
    %c0_i32 = arith.constant 0 : i32
    return %arg0, %arg1 : i32, i32
  }
}

module attributes {stable_mosaic.version = 11 : i64} {
  func.func @_reslstm_seq_kernel(%arg0: i32, %arg1: i32, %arg2: memref<8x8x128xf32, #tpu.memory_space<vmem>>, %arg3: memref<8x32xf32, #tpu.memory_space<vmem>>, %arg4: memref<8x32xf32, #tpu.memory_space<vmem>>, %arg5: memref<32x128xf32, #tpu.memory_space<vmem>>, %arg6: memref<8x8x32xf32, #tpu.memory_space<vmem>>, %arg7: memref<8x32xf32, #tpu.memory_space<vmem>>, %arg8: memref<8x32xf32, #tpu.memory_space<vmem>>, %arg9: memref<8x32xf32, #tpu.memory_space<vmem>>) attributes {dimension_semantics = [#tpu.dimension_semantics<parallel>, #tpu.dimension_semantics<arbitrary>], iteration_bounds = array<i64: 1, 1>, scalar_prefetch = 0 : i64, scratch_operands = 2 : i64, tpu.core_type = #tpu.core_type<tc>, window_params = [{transform_indices = @transform_0, window_bounds = array<i64: 8, 8, 128>}, {transform_indices = @transform_1, window_bounds = array<i64: 8, 32>}, {transform_indices = @transform_2, window_bounds = array<i64: 8, 32>}, {pipeline_mode = #tpu.pipeline_mode<synchronous>, transform_indices = @transform_3, window_bounds = array<i64: 32, 128>}, {transform_indices = @transform_4, window_bounds = array<i64: 8, 8, 32>}, {transform_indices = @transform_5, window_bounds = array<i64: 8, 32>}]} {
    %c0_i32 = arith.constant 0 : i32
    %0 = arith.cmpi eq, %arg1, %c0_i32 : i32
    %1 = arith.extui %0 : i1 to i32
    %c0_i32_0 = arith.constant 0 : i32
    %2 = arith.cmpi ne, %1, %c0_i32_0 : i32
    scf.if %2 {
      %c0_60 = arith.constant 0 : index
      %c0_61 = arith.constant 0 : index
      %203 = vector.load %arg3[%c0_60, %c0_61] : memref<8x32xf32, #tpu.memory_space<vmem>>, vector<8x32xf32>
      %c0_62 = arith.constant 0 : index
      %c0_63 = arith.constant 0 : index
      %204 = vector.load %arg8[%c0_62, %c0_63] : memref<8x32xf32, #tpu.memory_space<vmem>>, vector<8x32xf32>
      tpu.vector_store %arg8[%c0_62, %c0_63], %203 {strides = array<i32>} : memref<8x32xf32, #tpu.memory_space<vmem>>, vector<8x32xf32>,
      %c0_64 = arith.constant 0 : index
      %c0_65 = arith.constant 0 : index
      %205 = vector.load %arg4[%c0_64, %c0_65] : memref<8x32xf32, #tpu.memory_space<vmem>>, vector<8x32xf32>
      %c0_66 = arith.constant 0 : index
      %c0_67 = arith.constant 0 : index
      %206 = vector.load %arg9[%c0_66, %c0_67] : memref<8x32xf32, #tpu.memory_space<vmem>>, vector<8x32xf32>
      tpu.vector_store %arg9[%c0_66, %c0_67], %205 {strides = array<i32>} : memref<8x32xf32, #tpu.memory_space<vmem>>, vector<8x32xf32>,
    } else {
    }
    %c0 = arith.constant 0 : index
    %c0_1 = arith.constant 0 : index
    %3 = vector.load %arg5[%c0, %c0_1] : memref<32x128xf32, #tpu.memory_space<vmem>>, vector<32x128xf32>
    %c0_2 = arith.constant 0 : index
    %c0_3 = arith.constant 0 : index
    %4 = vector.load %arg8[%c0_2, %c0_3] : memref<8x32xf32, #tpu.memory_space<vmem>>, vector<8x32xf32>
    %c0_4 = arith.constant 0 : index
    %c0_5 = arith.constant 0 : index
    %5 = vector.load %arg9[%c0_4, %c0_5] : memref<8x32xf32, #tpu.memory_space<vmem>>, vector<8x32xf32>
    %c0_i32_6 = arith.constant 0 : i32
    %6 = arith.index_cast %c0_i32_6 : i32 to index
    %c0_7 = arith.constant 0 : index
    %c0_8 = arith.constant 0 : index
    %7 = vector.load %arg2[%6, %c0_7, %c0_8] : memref<8x8x128xf32, #tpu.memory_space<vmem>>, vector<1x8x128xf32>
    %8 = vector.shape_cast %7 : vector<1x8x128xf32> to vector<8x128xf32>
    %cst = arith.constant dense<0.000000e+00> : vector<8x128xf32>
    %9 = tpu.matmul %4, %3, %cst {dimension_numbers = #tpu.dot_dimension_numbers<[1], [0], [0], [1], [0, 0, 1, 1], [], []>} : vector<8x32xf32>, vector<32x128xf32>, vector<8x128xf32> -> vector<8x128xf32>
    %10 = arith.addf %8, %9 : vector<8x128xf32>
    %11 = vector.extract_strided_slice %10 {offsets = [0, 0], sizes = [8, 96], strides = [1, 1]} : vector<8x128xf32> to vector<8x96xf32>
    %12 = arith.negf %11 : vector<8x96xf32>
    %13 = math.exp %12 : vector<8x96xf32>
    %cst_9 = arith.constant 1.000000e+00 : f32
    %14 = vector.broadcast %cst_9 : f32 to vector<8x96xf32>
    %15 = arith.addf %14, %13 : vector<8x96xf32>
    %16 = arith.divf %14, %15 : vector<8x96xf32>
    %17 = vector.extract_strided_slice %16 {offsets = [0, 0], sizes = [8, 32], strides = [1, 1]} : vector<8x96xf32> to vector<8x32xf32>
    %18 = vector.extract_strided_slice %16 {offsets = [0, 32], sizes = [8, 32], strides = [1, 1]} : vector<8x96xf32> to vector<8x32xf32>
    %19 = vector.extract_strided_slice %16 {offsets = [0, 64], sizes = [8, 32], strides = [1, 1]} : vector<8x96xf32> to vector<8x32xf32>
    %20 = vector.extract_strided_slice %10 {offsets = [0, 96], sizes = [8, 32], strides = [1, 1]} : vector<8x128xf32> to vector<8x32xf32>
    %21 = arith.mulf %19, %5 : vector<8x32xf32>
    %22 = arith.mulf %17, %20 : vector<8x32xf32>
    %23 = arith.addf %21, %22 : vector<8x32xf32>
    %24 = math.tanh %23 : vector<8x32xf32>
    %25 = arith.mulf %18, %24 : vector<8x32xf32>
    %26 = arith.index_cast %c0_i32_6 : i32 to index
    %c0_10 = arith.constant 0 : index
    %c0_11 = arith.constant 0 : index
    %27 = vector.load %arg6[%26, %c0_10, %c0_11] : memref<8x8x32xf32, #tpu.memory_space<vmem>>, vector<1x8x32xf32>
    %28 = vector.shape_cast %27 : vector<1x8x32xf32> to vector<8x32xf32>
    %29 = vector.shape_cast %25 : vector<8x32xf32> to vector<1x8x32xf32>
    tpu.vector_store %arg6[%26, %c0_10, %c0_11], %29 {strides = array<i32>} : memref<8x8x32xf32, #tpu.memory_space<vmem>>, vector<1x8x32xf32>,
    %c1_i32 = arith.constant 1 : i32
    %30 = arith.index_cast %c1_i32 : i32 to index
    %c0_12 = arith.constant 0 : index
    %c0_13 = arith.constant 0 : index
    %31 = vector.load %arg2[%30, %c0_12, %c0_13] : memref<8x8x128xf32, #tpu.memory_space<vmem>>, vector<1x8x128xf32>
    %32 = vector.shape_cast %31 : vector<1x8x128xf32> to vector<8x128xf32>
    %cst_14 = arith.constant dense<0.000000e+00> : vector<8x128xf32>
    %33 = tpu.matmul %25, %3, %cst_14 {dimension_numbers = #tpu.dot_dimension_numbers<[1], [0], [0], [1], [0, 0, 1, 1], [], []>} : vector<8x32xf32>, vector<32x128xf32>, vector<8x128xf32> -> vector<8x128xf32>
    %34 = arith.addf %32, %33 : vector<8x128xf32>
    %35 = vector.extract_strided_slice %34 {offsets = [0, 0], sizes = [8, 96], strides = [1, 1]} : vector<8x128xf32> to vector<8x96xf32>
    %36 = arith.negf %35 : vector<8x96xf32>
    %37 = math.exp %36 : vector<8x96xf32>
    %cst_15 = arith.constant 1.000000e+00 : f32
    %38 = vector.broadcast %cst_15 : f32 to vector<8x96xf32>
    %39 = arith.addf %38, %37 : vector<8x96xf32>
    %40 = arith.divf %38, %39 : vector<8x96xf32>
    %41 = vector.extract_strided_slice %40 {offsets = [0, 0], sizes = [8, 32], strides = [1, 1]} : vector<8x96xf32> to vector<8x32xf32>
    %42 = vector.extract_strided_slice %40 {offsets = [0, 32], sizes = [8, 32], strides = [1, 1]} : vector<8x96xf32> to vector<8x32xf32>
    %43 = vector.extract_strided_slice %40 {offsets = [0, 64], sizes = [8, 32], strides = [1, 1]} : vector<8x96xf32> to vector<8x32xf32>
    %44 = vector.extract_strided_slice %34 {offsets = [0, 96], sizes = [8, 32], strides = [1, 1]} : vector<8x128xf32> to vector<8x32xf32>
    %45 = arith.mulf %43, %23 : vector<8x32xf32>
    %46 = arith.mulf %41, %44 : vector<8x32xf32>
    %47 = arith.addf %45, %46 : vector<8x32xf32>
    %48 = math.tanh %47 : vector<8x32xf32>
    %49 = arith.mulf %42, %48 : vector<8x32xf32>
    %50 = arith.index_cast %c1_i32 : i32 to index
    %c0_16 = arith.constant 0 : index
    %c0_17 = arith.constant 0 : index
    %51 = vector.load %arg6[%50, %c0_16, %c0_17] : memref<8x8x32xf32, #tpu.memory_space<vmem>>, vector<1x8x32xf32>
    %52 = vector.shape_cast %51 : vector<1x8x32xf32> to vector<8x32xf32>
    %53 = vector.shape_cast %49 : vector<8x32xf32> to vector<1x8x32xf32>
    tpu.vector_store %arg6[%50, %c0_16, %c0_17], %53 {strides = array<i32>} : memref<8x8x32xf32, #tpu.memory_space<vmem>>, vector<1x8x32xf32>,
    %c2_i32 = arith.constant 2 : i32
    %54 = arith.index_cast %c2_i32 : i32 to index
    %c0_18 = arith.constant 0 : index
    %c0_19 = arith.constant 0 : index
    %55 = vector.load %arg2[%54, %c0_18, %c0_19] : memref<8x8x128xf32, #tpu.memory_space<vmem>>, vector<1x8x128xf32>
    %56 = vector.shape_cast %55 : vector<1x8x128xf32> to vector<8x128xf32>
    %cst_20 = arith.constant dense<0.000000e+00> : vector<8x128xf32>
    %57 = tpu.matmul %49, %3, %cst_20 {dimension_numbers = #tpu.dot_dimension_numbers<[1], [0], [0], [1], [0, 0, 1, 1], [], []>} : vector<8x32xf32>, vector<32x128xf32>, vector<8x128xf32> -> vector<8x128xf32>
    %58 = arith.addf %56, %57 : vector<8x128xf32>
    %59 = vector.extract_strided_slice %58 {offsets = [0, 0], sizes = [8, 96], strides = [1, 1]} : vector<8x128xf32> to vector<8x96xf32>
    %60 = arith.negf %59 : vector<8x96xf32>
    %61 = math.exp %60 : vector<8x96xf32>
    %cst_21 = arith.constant 1.000000e+00 : f32
    %62 = vector.broadcast %cst_21 : f32 to vector<8x96xf32>
    %63 = arith.addf %62, %61 : vector<8x96xf32>
    %64 = arith.divf %62, %63 : vector<8x96xf32>
    %65 = vector.extract_strided_slice %64 {offsets = [0, 0], sizes = [8, 32], strides = [1, 1]} : vector<8x96xf32> to vector<8x32xf32>
    %66 = vector.extract_strided_slice %64 {offsets = [0, 32], sizes = [8, 32], strides = [1, 1]} : vector<8x96xf32> to vector<8x32xf32>
    %67 = vector.extract_strided_slice %64 {offsets = [0, 64], sizes = [8, 32], strides = [1, 1]} : vector<8x96xf32> to vector<8x32xf32>
    %68 = vector.extract_strided_slice %58 {offsets = [0, 96], sizes = [8, 32], strides = [1, 1]} : vector<8x128xf32> to vector<8x32xf32>
    %69 = arith.mulf %67, %47 : vector<8x32xf32>
    %70 = arith.mulf %65, %68 : vector<8x32xf32>
    %71 = arith.addf %69, %70 : vector<8x32xf32>
    %72 = math.tanh %71 : vector<8x32xf32>
    %73 = arith.mulf %66, %72 : vector<8x32xf32>
    %74 = arith.index_cast %c2_i32 : i32 to index
    %c0_22 = arith.constant 0 : index
    %c0_23 = arith.constant 0 : index
    %75 = vector.load %arg6[%74, %c0_22, %c0_23] : memref<8x8x32xf32, #tpu.memory_space<vmem>>, vector<1x8x32xf32>
    %76 = vector.shape_cast %75 : vector<1x8x32xf32> to vector<8x32xf32>
    %77 = vector.shape_cast %73 : vector<8x32xf32> to vector<1x8x32xf32>
    tpu.vector_store %arg6[%74, %c0_22, %c0_23], %77 {strides = array<i32>} : memref<8x8x32xf32, #tpu.memory_space<vmem>>, vector<1x8x32xf32>,
    %c3_i32 = arith.constant 3 : i32
    %78 = arith.index_cast %c3_i32 : i32 to index
    %c0_24 = arith.constant 0 : index
    %c0_25 = arith.constant 0 : index
    %79 = vector.load %arg2[%78, %c0_24, %c0_25] : memref<8x8x128xf32, #tpu.memory_space<vmem>>, vector<1x8x128xf32>
    %80 = vector.shape_cast %79 : vector<1x8x128xf32> to vector<8x128xf32>
    %cst_26 = arith.constant dense<0.000000e+00> : vector<8x128xf32>
    %81 = tpu.matmul %73, %3, %cst_26 {dimension_numbers = #tpu.dot_dimension_numbers<[1], [0], [0], [1], [0, 0, 1, 1], [], []>} : vector<8x32xf32>, vector<32x128xf32>, vector<8x128xf32> -> vector<8x128xf32>
    %82 = arith.addf %80, %81 : vector<8x128xf32>
    %83 = vector.extract_strided_slice %82 {offsets = [0, 0], sizes = [8, 96], strides = [1, 1]} : vector<8x128xf32> to vector<8x96xf32>
    %84 = arith.negf %83 : vector<8x96xf32>
    %85 = math.exp %84 : vector<8x96xf32>
    %cst_27 = arith.constant 1.000000e+00 : f32
    %86 = vector.broadcast %cst_27 : f32 to vector<8x96xf32>
    %87 = arith.addf %86, %85 : vector<8x96xf32>
    %88 = arith.divf %86, %87 : vector<8x96xf32>
    %89 = vector.extract_strided_slice %88 {offsets = [0, 0], sizes = [8, 32], strides = [1, 1]} : vector<8x96xf32> to vector<8x32xf32>
    %90 = vector.extract_strided_slice %88 {offsets = [0, 32], sizes = [8, 32], strides = [1, 1]} : vector<8x96xf32> to vector<8x32xf32>
    %91 = vector.extract_strided_slice %88 {offsets = [0, 64], sizes = [8, 32], strides = [1, 1]} : vector<8x96xf32> to vector<8x32xf32>
    %92 = vector.extract_strided_slice %82 {offsets = [0, 96], sizes = [8, 32], strides = [1, 1]} : vector<8x128xf32> to vector<8x32xf32>
    %93 = arith.mulf %91, %71 : vector<8x32xf32>
    %94 = arith.mulf %89, %92 : vector<8x32xf32>
    %95 = arith.addf %93, %94 : vector<8x32xf32>
    %96 = math.tanh %95 : vector<8x32xf32>
    %97 = arith.mulf %90, %96 : vector<8x32xf32>
    %98 = arith.index_cast %c3_i32 : i32 to index
    %c0_28 = arith.constant 0 : index
    %c0_29 = arith.constant 0 : index
    %99 = vector.load %arg6[%98, %c0_28, %c0_29] : memref<8x8x32xf32, #tpu.memory_space<vmem>>, vector<1x8x32xf32>
    %100 = vector.shape_cast %99 : vector<1x8x32xf32> to vector<8x32xf32>
    %101 = vector.shape_cast %97 : vector<8x32xf32> to vector<1x8x32xf32>
    tpu.vector_store %arg6[%98, %c0_28, %c0_29], %101 {strides = array<i32>} : memref<8x8x32xf32, #tpu.memory_space<vmem>>, vector<1x8x32xf32>,
    %c4_i32 = arith.constant 4 : i32
    %102 = arith.index_cast %c4_i32 : i32 to index
    %c0_30 = arith.constant 0 : index
    %c0_31 = arith.constant 0 : index
    %103 = vector.load %arg2[%102, %c0_30, %c0_31] : memref<8x8x128xf32, #tpu.memory_space<vmem>>, vector<1x8x128xf32>
    %104 = vector.shape_cast %103 : vector<1x8x128xf32> to vector<8x128xf32>
    %cst_32 = arith.constant dense<0.000000e+00> : vector<8x128xf32>
    %105 = tpu.matmul %97, %3, %cst_32 {dimension_numbers = #tpu.dot_dimension_numbers<[1], [0], [0], [1], [0, 0, 1, 1], [], []>} : vector<8x32xf32>, vector<32x128xf32>, vector<8x128xf32> -> vector<8x128xf32>
    %106 = arith.addf %104, %105 : vector<8x128xf32>
    %107 = vector.extract_strided_slice %106 {offsets = [0, 0], sizes = [8, 96], strides = [1, 1]} : vector<8x128xf32> to vector<8x96xf32>
    %108 = arith.negf %107 : vector<8x96xf32>
    %109 = math.exp %108 : vector<8x96xf32>
    %cst_33 = arith.constant 1.000000e+00 : f32
    %110 = vector.broadcast %cst_33 : f32 to vector<8x96xf32>
    %111 = arith.addf %110, %109 : vector<8x96xf32>
    %112 = arith.divf %110, %111 : vector<8x96xf32>
    %113 = vector.extract_strided_slice %112 {offsets = [0, 0], sizes = [8, 32], strides = [1, 1]} : vector<8x96xf32> to vector<8x32xf32>
    %114 = vector.extract_strided_slice %112 {offsets = [0, 32], sizes = [8, 32], strides = [1, 1]} : vector<8x96xf32> to vector<8x32xf32>
    %115 = vector.extract_strided_slice %112 {offsets = [0, 64], sizes = [8, 32], strides = [1, 1]} : vector<8x96xf32> to vector<8x32xf32>
    %116 = vector.extract_strided_slice %106 {offsets = [0, 96], sizes = [8, 32], strides = [1, 1]} : vector<8x128xf32> to vector<8x32xf32>
    %117 = arith.mulf %115, %95 : vector<8x32xf32>
    %118 = arith.mulf %113, %116 : vector<8x32xf32>
    %119 = arith.addf %117, %118 : vector<8x32xf32>
    %120 = math.tanh %119 : vector<8x32xf32>
    %121 = arith.mulf %114, %120 : vector<8x32xf32>
    %122 = arith.index_cast %c4_i32 : i32 to index
    %c0_34 = arith.constant 0 : index
    %c0_35 = arith.constant 0 : index
    %123 = vector.load %arg6[%122, %c0_34, %c0_35] : memref<8x8x32xf32, #tpu.memory_space<vmem>>, vector<1x8x32xf32>
    %124 = vector.shape_cast %123 : vector<1x8x32xf32> to vector<8x32xf32>
    %125 = vector.shape_cast %121 : vector<8x32xf32> to vector<1x8x32xf32>
    tpu.vector_store %arg6[%122, %c0_34, %c0_35], %125 {strides = array<i32>} : memref<8x8x32xf32, #tpu.memory_space<vmem>>, vector<1x8x32xf32>,
    %c5_i32 = arith.constant 5 : i32
    %126 = arith.index_cast %c5_i32 : i32 to index
    %c0_36 = arith.constant 0 : index
    %c0_37 = arith.constant 0 : index
    %127 = vector.load %arg2[%126, %c0_36, %c0_37] : memref<8x8x128xf32, #tpu.memory_space<vmem>>, vector<1x8x128xf32>
    %128 = vector.shape_cast %127 : vector<1x8x128xf32> to vector<8x128xf32>
    %cst_38 = arith.constant dense<0.000000e+00> : vector<8x128xf32>
    %129 = tpu.matmul %121, %3, %cst_38 {dimension_numbers = #tpu.dot_dimension_numbers<[1], [0], [0], [1], [0, 0, 1, 1], [], []>} : vector<8x32xf32>, vector<32x128xf32>, vector<8x128xf32> -> vector<8x128xf32>
    %130 = arith.addf %128, %129 : vector<8x128xf32>
    %131 = vector.extract_strided_slice %130 {offsets = [0, 0], sizes = [8, 96], strides = [1, 1]} : vector<8x128xf32> to vector<8x96xf32>
    %132 = arith.negf %131 : vector<8x96xf32>
    %133 = math.exp %132 : vector<8x96xf32>
    %cst_39 = arith.constant 1.000000e+00 : f32
    %134 = vector.broadcast %cst_39 : f32 to vector<8x96xf32>
    %135 = arith.addf %134, %133 : vector<8x96xf32>
    %136 = arith.divf %134, %135 : vector<8x96xf32>
    %137 = vector.extract_strided_slice %136 {offsets = [0, 0], sizes = [8, 32], strides = [1, 1]} : vector<8x96xf32> to vector<8x32xf32>
    %138 = vector.extract_strided_slice %136 {offsets = [0, 32], sizes = [8, 32], strides = [1, 1]} : vector<8x96xf32> to vector<8x32xf32>
    %139 = vector.extract_strided_slice %136 {offsets = [0, 64], sizes = [8, 32], strides = [1, 1]} : vector<8x96xf32> to vector<8x32xf32>
    %140 = vector.extract_strided_slice %130 {offsets = [0, 96], sizes = [8, 32], strides = [1, 1]} : vector<8x128xf32> to vector<8x32xf32>
    %141 = arith.mulf %139, %119 : vector<8x32xf32>
    %142 = arith.mulf %137, %140 : vector<8x32xf32>
    %143 = arith.addf %141, %142 : vector<8x32xf32>
    %144 = math.tanh %143 : vector<8x32xf32>
    %145 = arith.mulf %138, %144 : vector<8x32xf32>
    %146 = arith.index_cast %c5_i32 : i32 to index
    %c0_40 = arith.constant 0 : index
    %c0_41 = arith.constant 0 : index
    %147 = vector.load %arg6[%146, %c0_40, %c0_41] : memref<8x8x32xf32, #tpu.memory_space<vmem>>, vector<1x8x32xf32>
    %148 = vector.shape_cast %147 : vector<1x8x32xf32> to vector<8x32xf32>
    %149 = vector.shape_cast %145 : vector<8x32xf32> to vector<1x8x32xf32>
    tpu.vector_store %arg6[%146, %c0_40, %c0_41], %149 {strides = array<i32>} : memref<8x8x32xf32, #tpu.memory_space<vmem>>, vector<1x8x32xf32>,
    %c6_i32 = arith.constant 6 : i32
    %150 = arith.index_cast %c6_i32 : i32 to index
    %c0_42 = arith.constant 0 : index
    %c0_43 = arith.constant 0 : index
    %151 = vector.load %arg2[%150, %c0_42, %c0_43] : memref<8x8x128xf32, #tpu.memory_space<vmem>>, vector<1x8x128xf32>
    %152 = vector.shape_cast %151 : vector<1x8x128xf32> to vector<8x128xf32>
    %cst_44 = arith.constant dense<0.000000e+00> : vector<8x128xf32>
    %153 = tpu.matmul %145, %3, %cst_44 {dimension_numbers = #tpu.dot_dimension_numbers<[1], [0], [0], [1], [0, 0, 1, 1], [], []>} : vector<8x32xf32>, vector<32x128xf32>, vector<8x128xf32> -> vector<8x128xf32>
    %154 = arith.addf %152, %153 : vector<8x128xf32>
    %155 = vector.extract_strided_slice %154 {offsets = [0, 0], sizes = [8, 96], strides = [1, 1]} : vector<8x128xf32> to vector<8x96xf32>
    %156 = arith.negf %155 : vector<8x96xf32>
    %157 = math.exp %156 : vector<8x96xf32>
    %cst_45 = arith.constant 1.000000e+00 : f32
    %158 = vector.broadcast %cst_45 : f32 to vector<8x96xf32>
    %159 = arith.addf %158, %157 : vector<8x96xf32>
    %160 = arith.divf %158, %159 : vector<8x96xf32>
    %161 = vector.extract_strided_slice %160 {offsets = [0, 0], sizes = [8, 32], strides = [1, 1]} : vector<8x96xf32> to vector<8x32xf32>
    %162 = vector.extract_strided_slice %160 {offsets = [0, 32], sizes = [8, 32], strides = [1, 1]} : vector<8x96xf32> to vector<8x32xf32>
    %163 = vector.extract_strided_slice %160 {offsets = [0, 64], sizes = [8, 32], strides = [1, 1]} : vector<8x96xf32> to vector<8x32xf32>
    %164 = vector.extract_strided_slice %154 {offsets = [0, 96], sizes = [8, 32], strides = [1, 1]} : vector<8x128xf32> to vector<8x32xf32>
    %165 = arith.mulf %163, %143 : vector<8x32xf32>
    %166 = arith.mulf %161, %164 : vector<8x32xf32>
    %167 = arith.addf %165, %166 : vector<8x32xf32>
    %168 = math.tanh %167 : vector<8x32xf32>
    %169 = arith.mulf %162, %168 : vector<8x32xf32>
    %170 = arith.index_cast %c6_i32 : i32 to index
    %c0_46 = arith.constant 0 : index
    %c0_47 = arith.constant 0 : index
    %171 = vector.load %arg6[%170, %c0_46, %c0_47] : memref<8x8x32xf32, #tpu.memory_space<vmem>>, vector<1x8x32xf32>
    %172 = vector.shape_cast %171 : vector<1x8x32xf32> to vector<8x32xf32>
    %173 = vector.shape_cast %169 : vector<8x32xf32> to vector<1x8x32xf32>
    tpu.vector_store %arg6[%170, %c0_46, %c0_47], %173 {strides = array<i32>} : memref<8x8x32xf32, #tpu.memory_space<vmem>>, vector<1x8x32xf32>,
    %c7_i32 = arith.constant 7 : i32
    %174 = arith.index_cast %c7_i32 : i32 to index
    %c0_48 = arith.constant 0 : index
    %c0_49 = arith.constant 0 : index
    %175 = vector.load %arg2[%174, %c0_48, %c0_49] : memref<8x8x128xf32, #tpu.memory_space<vmem>>, vector<1x8x128xf32>
    %176 = vector.shape_cast %175 : vector<1x8x128xf32> to vector<8x128xf32>
    %cst_50 = arith.constant dense<0.000000e+00> : vector<8x128xf32>
    %177 = tpu.matmul %169, %3, %cst_50 {dimension_numbers = #tpu.dot_dimension_numbers<[1], [0], [0], [1], [0, 0, 1, 1], [], []>} : vector<8x32xf32>, vector<32x128xf32>, vector<8x128xf32> -> vector<8x128xf32>
    %178 = arith.addf %176, %177 : vector<8x128xf32>
    %179 = vector.extract_strided_slice %178 {offsets = [0, 0], sizes = [8, 96], strides = [1, 1]} : vector<8x128xf32> to vector<8x96xf32>
    %180 = arith.negf %179 : vector<8x96xf32>
    %181 = math.exp %180 : vector<8x96xf32>
    %cst_51 = arith.constant 1.000000e+00 : f32
    %182 = vector.broadcast %cst_51 : f32 to vector<8x96xf32>
    %183 = arith.addf %182, %181 : vector<8x96xf32>
    %184 = arith.divf %182, %183 : vector<8x96xf32>
    %185 = vector.extract_strided_slice %184 {offsets = [0, 0], sizes = [8, 32], strides = [1, 1]} : vector<8x96xf32> to vector<8x32xf32>
    %186 = vector.extract_strided_slice %184 {offsets = [0, 32], sizes = [8, 32], strides = [1, 1]} : vector<8x96xf32> to vector<8x32xf32>
    %187 = vector.extract_strided_slice %184 {offsets = [0, 64], sizes = [8, 32], strides = [1, 1]} : vector<8x96xf32> to vector<8x32xf32>
    %188 = vector.extract_strided_slice %178 {offsets = [0, 96], sizes = [8, 32], strides = [1, 1]} : vector<8x128xf32> to vector<8x32xf32>
    %189 = arith.mulf %187, %167 : vector<8x32xf32>
    %190 = arith.mulf %185, %188 : vector<8x32xf32>
    %191 = arith.addf %189, %190 : vector<8x32xf32>
    %192 = math.tanh %191 : vector<8x32xf32>
    %193 = arith.mulf %186, %192 : vector<8x32xf32>
    %194 = arith.index_cast %c7_i32 : i32 to index
    %c0_52 = arith.constant 0 : index
    %c0_53 = arith.constant 0 : index
    %195 = vector.load %arg6[%194, %c0_52, %c0_53] : memref<8x8x32xf32, #tpu.memory_space<vmem>>, vector<1x8x32xf32>
    %196 = vector.shape_cast %195 : vector<1x8x32xf32> to vector<8x32xf32>
    %197 = vector.shape_cast %193 : vector<8x32xf32> to vector<1x8x32xf32>
    tpu.vector_store %arg6[%194, %c0_52, %c0_53], %197 {strides = array<i32>} : memref<8x8x32xf32, #tpu.memory_space<vmem>>, vector<1x8x32xf32>,
    %c8_i32 = arith.constant 8 : i32
    %c0_54 = arith.constant 0 : index
    %c0_55 = arith.constant 0 : index
    %198 = vector.load %arg8[%c0_54, %c0_55] : memref<8x32xf32, #tpu.memory_space<vmem>>, vector<8x32xf32>
    tpu.vector_store %arg8[%c0_54, %c0_55], %193 {strides = array<i32>} : memref<8x32xf32, #tpu.memory_space<vmem>>, vector<8x32xf32>,
    %c0_56 = arith.constant 0 : index
    %c0_57 = arith.constant 0 : index
    %199 = vector.load %arg9[%c0_56, %c0_57] : memref<8x32xf32, #tpu.memory_space<vmem>>, vector<8x32xf32>
    tpu.vector_store %arg9[%c0_56, %c0_57], %191 {strides = array<i32>} : memref<8x32xf32, #tpu.memory_space<vmem>>, vector<8x32xf32>,
    %c0_i32_58 = arith.constant 0 : i32
    %200 = arith.cmpi eq, %arg1, %c0_i32_58 : i32
    %201 = arith.extui %200 : i1 to i32
    %c0_i32_59 = arith.constant 0 : i32
    %202 = arith.cmpi ne, %201, %c0_i32_59 : i32
    scf.if %202 {
      %c0_60 = arith.constant 0 : index
      %c0_61 = arith.constant 0 : index
      %203 = vector.load %arg7[%c0_60, %c0_61] : memref<8x32xf32, #tpu.memory_space<vmem>>, vector<8x32xf32>
      tpu.vector_store %arg7[%c0_60, %c0_61], %191 {strides = array<i32>} : memref<8x32xf32, #tpu.memory_space<vmem>>, vector<8x32xf32>,
    } else {
    }
    return
  }
  func.func @transform_0(%arg0: i32, %arg1: i32) -> (i32, i32, i32) {
    %c0_i32 = arith.constant 0 : i32
    %c0_i32_0 = arith.constant 0 : i32
    return %arg1, %arg0, %c0_i32 : i32, i32, i32
  }
  func.func @transform_1(%arg0: i32, %arg1: i32) -> (i32, i32) {
    %c0_i32 = arith.constant 0 : i32
    %c0_i32_0 = arith.constant 0 : i32
    return %arg0, %c0_i32 : i32, i32
  }
  func.func @transform_2(%arg0: i32, %arg1: i32) -> (i32, i32) {
    %c0_i32 = arith.constant 0 : i32
    %c0_i32_0 = arith.constant 0 : i32
    return %arg0, %c0_i32 : i32, i32
  }
  func.func @transform_3(%arg0: i32, %arg1: i32) -> (i32, i32) {
    %c0_i32 = arith.constant 0 : i32
    %c0_i32_0 = arith.constant 0 : i32
    %c0_i32_1 = arith.constant 0 : i32
    return %c0_i32, %c0_i32_0 : i32, i32
  }
  func.func @transform_4(%arg0: i32, %arg1: i32) -> (i32, i32, i32) {
    %c0_i32 = arith.constant 0 : i32
    %c0_i32_0 = arith.constant 0 : i32
    return %arg1, %arg0, %c0_i32 : i32, i32, i32
  }
  func.func @transform_5(%arg0: i32, %arg1: i32) -> (i32, i32) {
    %c0_i32 = arith.constant 0 : i32
    %c0_i32_0 = arith.constant 0 : i32
    return %arg0, %c0_i32 : i32, i32
  }
}

</mosaic_0001>

<bundles_post_ra>
// kernel: reslstm_sequence.2
= control target key start
LH: loop header
LB: loop body
LE: loop exit
PB: predicated region body
PF: predicated region fallthrough
CT: control target
= control target key end

     0   :  { %8 = vsyncpa [#allocation3], 0  ;;  %s367_s0 = inlined_call_operand.hbm [shape: f32[64,32], index: 0, kind: input, shape index: {}]   ;;  %s368_s1 = inlined_call_operand.hbm [shape: f32[32,128], index: 1, kind: input, shape index: {}]   ;;  %s369_s2 = inlined_call_operand.vmem [shape: f32[1,128], index: 2, kind: input, shape index: {}]   ;;  %s370_s3 = inlined_call_operand.vmem [shape: f32[64,128], index: 3, kind: output, shape index: {}]  }
   0x1   :  { %9 = vsyncpa [#allocation5], 0  ;;  %s302_s12 = smov [#allocation2]  }
   0x2   :  { %s15_s13 = sshll.u32 %s302_s12, 4  ;;  %s16_s13 = int_to_ptr.vmem [resolvable:$true] %s15_s13 }
   0x3   :  { %s266_s14 = scalar_lea.vmem %s16_s13, 1024  ;;  %p271_p1 = scmp.lt.s32.totalorder %s16_s13, %s16_s13 }
   0x4   :  { %p267_p0 = scmp.ne.s32.totalorder %s16_s13, %s266_s14  ;;  %p272_p2 = scmp.lt.s32.totalorder %s266_s14, %s266_s14 }
   0x6   :  { %p273_p3 = por %p272_p2, %p271_p1 }
   0x8   :  { %p274_p4 = pnand %p273_p3, %p267_p0 }
   0xa   :  { %277 = shalt.err (!%p274_p4)
}
   0xb   :  { %s303_s15 = smov 128   ;;  %s304_s16 = smov 8  }
   0xc   :  { %21 = dma.hbm_to_vmem [thread:$0]  %s367_s0, 1024, %s16_s13, [#allocation3], %s303_s15, %s303_s15, %s304_s16  }
   0xd   :  { %s305_s19 = smov [#allocation4]  }
   0xe   :  { %s27_s20 = sshll.u32 %s305_s19, 4  ;;  %s28_s20 = int_to_ptr.vmem [resolvable:$true] %s27_s20 }
   0xf   :  { %s286_s21 = scalar_lea.vmem %s28_s20, 512  ;;  %p291_p6 = scmp.lt.s32.totalorder %s28_s20, %s28_s20 }
  0x10   :  { %p287_p5 = scmp.ne.s32.totalorder %s28_s20, %s286_s21  ;;  %p292_p7 = scmp.lt.s32.totalorder %s286_s21, %s286_s21 }
  0x12   :  { %p293_p8 = por %p292_p7, %p291_p6 }
  0x14   :  { %p294_p9 = pnand %p293_p8, %p287_p5 }
  0x16   :  { %297 = shalt.err (!%p294_p9)
}
  0x17   :  { %33 = dma.hbm_to_vmem [thread:$0]  %s368_s1, 512, %s28_s20, [#allocation5], %s303_s15, %s303_s15, %s304_s16  }
  0x18   :  { %298 = dma.done.wait [#allocation3], 1024  }
  0x19   :  { %299 = vsyncadd [#allocation3], 4294966272 }
  0x1a   :  { %300 = dma.done.wait [#allocation5], 512  }
  0x1b   :  { %301 = vsyncadd [#allocation5], 4294966784  ;;  %v53_v0 = vld [vmem:[#allocation4 + $0x18] sm:$0xff]  ;;  %v52_v1 = vld [vmem:[#allocation4 + $0x10] sm:$0xff]  ;;  %vm61_vm0 = vcmask 261120  }
  0x1c   :  { %226 = vmatprep.subr.mxu0 %v53_v0  ;;  %246 = vmatprep.subr.mxu1 %v53_v0  ;;  %v51_v2 = vld [vmem:[#allocation4 + $0x8] sm:$0xff]  ;;  %v50_v3 = vld [vmem:[#allocation4] sm:$0xff]  ;;  %v44_v8 = vld [vmem:[#allocation2 + $0x10] sm:$0xff] }
  0x1d   :  { %227 = vmatpush3.msra.mxu0 %v53_v0  ;;  %250 = vmatpush3.msra.mxu1 %v53_v0  ;;  %v42_v4 = vld [vmem:[#allocation2] sm:$0xff]  ;;  %v43_v6 = vld [vmem:[#allocation2 + $0x8] sm:$0xff]  ;;  %v48_v9 = vld [vmem:[#allocation2 + $0x30] sm:$0xff] }
  0x1e   :  { %228 = vmatprep.subr.mxu0 %v52_v1  ;;  %247 = vmatprep.subr.mxu1 %v52_v1  ;;  %v46_v5 = vld [vmem:[#allocation2 + $0x20] sm:$0xff]  ;;  %v47_v7 = vld [vmem:[#allocation2 + $0x28] sm:$0xff]  ;;  %v45_v10 = vld [vmem:[#allocation2 + $0x18] sm:$0xff] }
  0x1f   :  { %229 = vmatpush3.msra.mxu0 %v52_v1  ;;  %251 = vmatpush3.msra.mxu1 %v52_v1  ;;  %v49_v11 = vld [vmem:[#allocation2 + $0x38] sm:$0xff]  ;;  %v205_v12 = vld [vmem:[%s369_s2] ss:$0 sm:$0xff] }
  0x20   :  { %230 = vmatprep.subr.mxu0 %v51_v2  ;;  %248 = vmatprep.subr.mxu1 %v51_v2 }
  0x21   :  { %231 = vmatpush3.msra.mxu0 %v51_v2  ;;  %252 = vmatpush3.msra.mxu1 %v51_v2 }
  0x22   :  { %232 = vmatprep.subr.mxu0 %v50_v3  ;;  %249 = vmatprep.subr.mxu1 %v50_v3 }
  0x23   :  { %233 = vmatpush3.msra.mxu0 %v50_v3  ;;  %253 = vmatpush3.msra.mxu1 %v50_v3 }
  0x24   :  { %234 = vmatprep.mubr.msk.f32.mxu0 %vm61_vm0, %v42_v4  ;;  %240 = vmatprep.mubr.msk.f32.mxu1 %vm61_vm0, %v46_v5 }
  0x25   :  { %235 = vmatmul.mubr.msk.f32.vlgmr.msra.gmra.mxu0 %vm61_vm0, %v43_v6  ;;  %241 = vmatmul.mubr.msk.f32.vlgmr.msra.gmra.mxu1 %vm61_vm0, %v47_v7 }
  0x26   :  { %237 = vmatprep.mubr.msk.f32.mxu0 %vm61_vm0, %v44_v8  ;;  %243 = vmatprep.mubr.msk.f32.mxu1 %vm61_vm0, %v48_v9 }
  0x29   :  { %238 = vmatmul.mubr.msk.f32.gmra.mxu0 %vm61_vm0, %v45_v10  ;;  %244 = vmatmul.mubr.msk.f32.gmra.mxu1 %vm61_vm0, %v49_v11 }
  0xe5   :  { %v236_v13 = vpop.f32.mrf.mxu0  ;;  %v242_v14 = vpop.f32.mrf.mxu1 }
  0xe6   :  { %v158_v15 = vadd.f32 %v236_v13, %v205_v12  ;;  %v178_v16 = vadd.f32 %v242_v14, %v205_v12 }
  0xe7   :  { %v152_v17 = vpop.f32.mrf.mxu0  ;;  %v172_v18 = vpop.f32.mrf.mxu1 }
  0xe8   :  { %192 = vst [vmem:[%s370_s3 + $0x8] sm:$0xff] %v158_v15  ;;  %196 = vst [vmem:[%s370_s3 + $0x28] sm:$0xff] %v178_v16  ;;  %v153_v19 = vadd.f32 %v205_v12, %v152_v17  ;;  %v173_v20 = vadd.f32 %v205_v12, %v172_v18 }
  0xe9   :  { %v239_v21 = vpop.f32.mrf.mxu0  ;;  %v245_v22 = vpop.f32.mrf.mxu1 }
  0xea   :  { %191 = vst [vmem:[%s370_s3] sm:$0xff] %v153_v19  ;;  %195 = vst [vmem:[%s370_s3 + $0x20] sm:$0xff] %v173_v20  ;;  %v168_v23 = vadd.f32 %v239_v21, %v205_v12  ;;  %v188_v24 = vadd.f32 %v245_v22, %v205_v12 }
  0xeb   :  { %v162_v25 = vpop.f32.mrf.mxu0  ;;  %v182_v26 = vpop.f32.mrf.mxu1 }
  0xec   :  { %194 = vst [vmem:[%s370_s3 + $0x18] sm:$0xff] %v168_v23  ;;  %198 = vst [vmem:[%s370_s3 + $0x38] sm:$0xff] %v188_v24  ;;  %v163_v27 = vadd.f32 %v205_v12, %v162_v25  ;;  %v183_v28 = vadd.f32 %v205_v12, %v182_v26 }
  0xee   :  { %193 = vst [vmem:[%s370_s3 + $0x10] sm:$0xff] %v163_v27  ;;  %197 = vst [vmem:[%s370_s3 + $0x30] sm:$0xff] %v183_v28 }
  0xef   :  { %203 = vsyncpa [#allocation3], 1 }
  0xf0   :  { %204 = vsyncpa [#allocation5], 1 }

// kernel: reslstm_sequence.3
= control target key start
LH: loop header
LB: loop body
LE: loop exit
PB: predicated region body
PF: predicated region fallthrough
CT: control target
= control target key end

     0   :  { %11 = vsyncpa [#allocation5], 0  ;;  %vm26_vm0 = vcmask 261120   ;;  %v1164_v1 = vmov 0.0   ;;  %vm1165_vm1 = vmmov 0   ;;  %s1394_s0 = inlined_call_operand.vmem [shape: f32[8,8,128], index: 0, kind: input, shape index: {}]   ;;  %s1395_s1 = inlined_call_operand.vmem [shape: f32[8,32], index: 1, kind: input, shape index: {}]   ;;  %s1396_s2 = inlined_call_operand.vmem [shape: f32[8,32], index: 2, kind: input, shape index: {}]   ;;  %s1397_s3 = inlined_call_operand.vmem [shape: f32[32,128], index: 3, kind: input, shape index: {}]   ;;  %s1398_s4 = inlined_call_operand.hbm [shape: f32[8,8,32], index: 4, kind: output, shape index: {0}]   ;;  %s1399_s5 = inlined_call_operand.hbm [shape: f32[8,32], index: 5, kind: output, shape index: {1}]  }
   0x1   :  { %v1206_v0 = vld [vmem:[%s1397_s3 + $0x18] sm:$0xff]  ;;  %975 = vmatprep.subr.mxu0 %v1164_v1  ;;  %v1212_v2 = vld [vmem:[%s1397_s3 + $0x10] sm:$0xff]  ;;  %983 = vmatprep.mubr.msk.f32.mxu0 %vm1165_vm1, %v1164_v1  ;;  %v25_v3 = vld [vmem:[%s1395_s1] sm:$0xff] }
   0x2   :  { %976 = vmatpush3.msra.mxu0 %v1206_v0  ;;  %27 = vst.msk [vmem:[#allocation2] sm:$0xff] %vm26_vm0, %v25_v3  ;;  %986 = vmatprep.subr.mxu1 %v1164_v1 }
   0x3   :  { %12 = vsyncpa [#allocation7], 0  ;;  %977 = vmatprep.subr.mxu0 %v1164_v1  ;;  %v1226_v4 = vld [vmem:[%s1397_s3 + $0x8] sm:$0xff]  ;;  %987 = vmatpush3.msra.mxu1 %v1206_v0  ;;  %v1235_v5 = vld [vmem:[%s1397_s3] sm:$0xff]  ;;  %s1166_s30 = smov 32   ;;  %s1167_s6 = smov 64  }
   0x4   :  { %978 = vmatpush3.msra.mxu0 %v1212_v2  ;;  %988 = vmatprep.subr.mxu1 %v1164_v1  ;;  %v28_v7 = vld [vmem:[%s1396_s2] sm:$0xff]  ;;  %s1168_s2 = smov 96   ;;  %v914_v27 = vld [vmem:[%s1394_s0 + $0x8] sm:$0xff]  ;;  %v917_v44 = vld [vmem:[%s1394_s0 + $0x10] sm:$0xff] }
   0x5   :  { %979 = vmatprep.subr.mxu0 %v1164_v1  ;;  %989 = vmatpush3.msra.mxu1 %v1212_v2  ;;  %29 = vst.msk [vmem:[#allocation3] sm:$0xff] %vm26_vm0, %v28_v7  ;;  %v36_v8 = vld [vmem:[%s1394_s0] sm:$0xff]  ;;  %v920_v61 = vld [vmem:[%s1394_s0 + $0x18] sm:$0xff] }
   0x6   :  { %980 = vmatpush3.msra.mxu0 %v1226_v4  ;;  %990 = vmatprep.subr.mxu1 %v1164_v1 }
   0x7   :  { %981 = vmatprep.subr.mxu0 %v1164_v1  ;;  %991 = vmatpush3.msra.mxu1 %v1226_v4 }
   0x8   :  { %982 = vmatpush3.msra.mxu0 %v1235_v5  ;;  %992 = vmatprep.subr.mxu1 %v1164_v1 }
   0x9   :  { %v34_v6 = vld [vmem:[#allocation2] sm:$0xff]  ;;  %993 = vmatpush3.msra.mxu1 %v1235_v5  ;;  %994 = vmatprep.mubr.msk.f32.mxu1 %vm1165_vm1, %v1164_v1 }
   0xa   :  { %984 = vmatmul.mubr.msk.f32.vlgmr.msra.gmra.mxu0 %vm26_vm0, %v34_v6  ;;  %997 = vmatprep.subr.mxu0 %v1164_v1 }
   0xb   :  { %998 = vmatpush3.msra.mxu0 %v1206_v0  ;;  %1005 = vmatprep.mubr.msk.f32.mxu0 %vm1165_vm1, %v1164_v1 }
   0xc   :  { %999 = vmatprep.subr.mxu0 %v1164_v1  ;;  %1008 = vmatprep.subr.mxu1 %v1164_v1  ;;  %v35_v12 = vld [vmem:[#allocation3] sm:$0xff] }
   0xd   :  { %1000 = vmatpush3.msra.mxu0 %v1212_v2 }
   0xe   :  { %1001 = vmatprep.subr.mxu0 %v1164_v1 }
   0xf   :  { %1002 = vmatpush3.msra.mxu0 %v1226_v4 }
  0x10   :  { %1003 = vmatprep.subr.mxu0 %v1164_v1 }
  0x11   :  { %1004 = vmatpush3.msra.mxu0 %v1235_v5 }
  0x12   :  { %1019 = vmatprep.subr.mxu0 %v1164_v1 }
  0xca   :  { %v107_v9 = vpop.f32.mrf.mxu0 }
  0xcb   :  { %v111_v10 = vadd.f32 %v107_v9, %v36_v8 }
  0xcc   :  { %v985_v11 = vpop.f32.mrf.mxu0 }
  0xcd   :  { %124 = vrot.lane.b32.xlu0 %v111_v10, %s1166_s30  ;;  %v913_v13 = vmul.f32 -1.442695, %v111_v10 }
  0xcf   :  { %1072 = vpow2.f32 %v913_v13 }
  0xd1   :  { %119 = vrot.lane.b32.xlu0 %v35_v12, %s1167_s6 }
  0xdc   :  { %v1073_v14 = vpop.eup %1072 }
  0xdd   :  { %v115_v15 = vadd.f32 1.0, %v1073_v14 }
  0xdf   :  { %1074 = vrcp.f32 %v115_v15 }
  0xec   :  { %v1075_v16 = vpop.eup %1074 }
 0x13f   :  { %v125_v17 = vpop.permute.xlu0 %124 }
 0x140   :  { %v127_v18 = vmul.f32 %v1075_v16, %v125_v17 }
 0x142   :  { %129 = vrot.lane.b32.xlu1 %v127_v18, %s1167_s6 }
 0x143   :  { %v120_v19 = vpop.permute.xlu0 %119 }
 0x144   :  { %v122_v20 = vmul.f32 %v1075_v16, %v120_v19  ;;  %v923_v19 = vld [vmem:[%s1394_s0 + $0x20] sm:$0xff] }
 0x1b4   :  { %v130_v21 = vpop.permute.xlu1 %129 }
 0x1b5   :  { %v132_v22 = vadd.f32 %v130_v21, %v122_v20 }
 0x1b7   :  { %1076 = vtanh.f32 %v132_v22 }
 0x1c4   :  { %v1077_v23 = vpop.eup %1076 }
 0x1c5   :  { %135 = vrot.lane.b32.xlu1 %v1077_v23, %s1168_s2 }
 0x237   :  { %v136_v24 = vpop.permute.xlu1 %135 }
 0x238   :  { %v138_v25 = vmul.f32 %v1075_v16, %v136_v24 }
 0x23a   :  { %140 = vrot.lane.b32.xlu0 %v138_v25, %s1168_s2 }
 0x2ac   :  { %v141_v26 = vpop.permute.xlu0 %140 }
 0x2ad   :  { %143 = vst.msk [vmem:[#allocation4] sm:$0xff] %vm26_vm0, %v141_v26  ;;  %995 = vmatmul.mubr.msk.f32.vlgmr.msra.gmra.mxu1 %vm26_vm0, %v141_v26 }
 0x2ae   :  { %1009 = vmatpush3.msra.mxu1 %v1206_v0  ;;  %1016 = vmatprep.mubr.msk.f32.mxu1 %vm1165_vm1, %v1164_v1 }
 0x2af   :  { %1010 = vmatprep.subr.mxu1 %v1164_v1 }
 0x2b0   :  { %1011 = vmatpush3.msra.mxu1 %v1212_v2 }
 0x2b1   :  { %1012 = vmatprep.subr.mxu1 %v1164_v1 }
 0x2b2   :  { %1013 = vmatpush3.msra.mxu1 %v1226_v4 }
 0x2b3   :  { %1014 = vmatprep.subr.mxu1 %v1164_v1 }
 0x2b4   :  { %1015 = vmatpush3.msra.mxu1 %v1235_v5 }
 0x2b5   :  { %1030 = vmatprep.subr.mxu1 %v1164_v1 }
 0x36d   :  { %v214_v28 = vpop.f32.mrf.mxu1 }
 0x36e   :  { %v218_v29 = vadd.f32 %v914_v27, %v214_v28 }
 0x36f   :  { %v996_v30 = vpop.f32.mrf.mxu1 }
 0x370   :  { %227 = vrot.lane.b32.xlu1 %v218_v29, %s1166_s30  ;;  %v916_v31 = vmul.f32 -1.442695, %v218_v29 }
 0x372   :  { %1078 = vpow2.f32 %v916_v31 }
 0x37f   :  { %v1079_v32 = vpop.eup %1078 }
 0x380   :  { %v222_v33 = vadd.f32 1.0, %v1079_v32 }
 0x382   :  { %1080 = vrcp.f32 %v222_v33 }
 0x38f   :  { %v1081_v34 = vpop.eup %1080 }
 0x390   :  { %v225_v37 = vmul.f32 %v1081_v34, %v132_v22 }
 0x3e2   :  { %v228_v35 = vpop.permute.xlu1 %227 }
 0x3e3   :  { %v230_v36 = vmul.f32 %v1081_v34, %v228_v35 }
 0x3e5   :  { %232 = vrot.lane.b32.xlu0 %v230_v36, %s1167_s6  ;;  %v926_v36 = vld [vmem:[%s1394_s0 + $0x28] sm:$0xff] }
 0x457   :  { %v233_v38 = vpop.permute.xlu0 %232 }
 0x458   :  { %v235_v39 = vadd.f32 %v233_v38, %v225_v37 }
 0x45a   :  { %1082 = vtanh.f32 %v235_v39 }
 0x467   :  { %v1083_v40 = vpop.eup %1082 }
 0x468   :  { %238 = vrot.lane.b32.xlu1 %v1083_v40, %s1168_s2 }
 0x4da   :  { %v239_v41 = vpop.permute.xlu1 %238 }
 0x4db   :  { %v241_v42 = vmul.f32 %v1081_v34, %v239_v41 }
 0x4dd   :  { %243 = vrot.lane.b32.xlu0 %v241_v42, %s1168_s2 }
 0x54f   :  { %v244_v43 = vpop.permute.xlu0 %243 }
 0x550   :  { %247 = vst.msk [vmem:[#allocation4 + $0x8] sm:$0xff] %vm26_vm0, %v244_v43  ;;  %1006 = vmatmul.mubr.msk.f32.vlgmr.msra.gmra.mxu0 %vm26_vm0, %v244_v43 }
 0x551   :  { %1020 = vmatpush3.msra.mxu0 %v1206_v0  ;;  %1027 = vmatprep.mubr.msk.f32.mxu0 %vm1165_vm1, %v1164_v1 }
 0x552   :  { %1021 = vmatprep.subr.mxu0 %v1164_v1 }
 0x553   :  { %1022 = vmatpush3.msra.mxu0 %v1212_v2 }
 0x554   :  { %1023 = vmatprep.subr.mxu0 %v1164_v1 }
 0x555   :  { %1024 = vmatpush3.msra.mxu0 %v1226_v4 }
 0x556   :  { %1025 = vmatprep.subr.mxu0 %v1164_v1 }
 0x557   :  { %1026 = vmatpush3.msra.mxu0 %v1235_v5 }
 0x558   :  { %1041 = vmatprep.subr.mxu0 %v1164_v1 }
 0x610   :  { %v318_v45 = vpop.f32.mrf.mxu0 }
 0x611   :  { %v322_v46 = vadd.f32 %v917_v44, %v318_v45 }
 0x612   :  { %v1007_v47 = vpop.f32.mrf.mxu0 }
 0x613   :  { %331 = vrot.lane.b32.xlu1 %v322_v46, %s1166_s30  ;;  %v919_v48 = vmul.f32 -1.442695, %v322_v46 }
 0x615   :  { %1084 = vpow2.f32 %v919_v48  ;;  %v929_v48 = vld [vmem:[%s1394_s0 + $0x30] sm:$0xff] }
 0x622   :  { %v1085_v49 = vpop.eup %1084 }
 0x623   :  { %v326_v50 = vadd.f32 1.0, %v1085_v49 }
 0x625   :  { %1086 = vrcp.f32 %v326_v50 }
 0x632   :  { %v1087_v51 = vpop.eup %1086 }
 0x633   :  { %v329_v54 = vmul.f32 %v1087_v51, %v235_v39 }
 0x685   :  { %v332_v52 = vpop.permute.xlu1 %331 }
 0x686   :  { %v334_v53 = vmul.f32 %v1087_v51, %v332_v52 }
 0x688   :  { %336 = vrot.lane.b32.xlu0 %v334_v53, %s1167_s6 }
 0x6fa   :  { %v337_v55 = vpop.permute.xlu0 %336 }
 0x6fb   :  { %v339_v56 = vadd.f32 %v337_v55, %v329_v54 }
 0x6fd   :  { %1088 = vtanh.f32 %v339_v56 }
 0x70a   :  { %v1089_v57 = vpop.eup %1088 }
 0x70b   :  { %342 = vrot.lane.b32.xlu1 %v1089_v57, %s1168_s2 }
 0x77d   :  { %v343_v58 = vpop.permute.xlu1 %342 }
 0x77e   :  { %v345_v59 = vmul.f32 %v1087_v51, %v343_v58 }
 0x780   :  { %347 = vrot.lane.b32.xlu0 %v345_v59, %s1168_s2 }
 0x7f2   :  { %v348_v60 = vpop.permute.xlu0 %347 }
 0x7f3   :  { %351 = vst.msk [vmem:[#allocation4 + $0x10] sm:$0xff] %vm26_vm0, %v348_v60  ;;  %1017 = vmatmul.mubr.msk.f32.vlgmr.msra.gmra.mxu1 %vm26_vm0, %v348_v60 }
 0x7f4   :  { %1031 = vmatpush3.msra.mxu1 %v1206_v0  ;;  %1038 = vmatprep.mubr.msk.f32.mxu1 %vm1165_vm1, %v1164_v1 }
 0x7f5   :  { %1032 = vmatprep.subr.mxu1 %v1164_v1 }
 0x7f6   :  { %1033 = vmatpush3.msra.mxu1 %v1212_v2 }
 0x7f7   :  { %1034 = vmatprep.subr.mxu1 %v1164_v1 }
 0x7f8   :  { %1035 = vmatpush3.msra.mxu1 %v1226_v4 }
 0x7f9   :  { %1036 = vmatprep.subr.mxu1 %v1164_v1 }
 0x7fa   :  { %1037 = vmatpush3.msra.mxu1 %v1235_v5 }
 0x7fb   :  { %1052 = vmatprep.subr.mxu1 %v1164_v1 }
 0x8b3   :  { %v422_v62 = vpop.f32.mrf.mxu1 }
 0x8b4   :  { %v426_v63 = vadd.f32 %v920_v61, %v422_v62 }
 0x8b5   :  { %v1018_v3 = vpop.f32.mrf.mxu1 }
 0x8b6   :  { %435 = vrot.lane.b32.xlu1 %v426_v63, %s1166_s30  ;;  %v922_v6 = vmul.f32 -1.442695, %v426_v63 }
 0x8b8   :  { %1090 = vpow2.f32 %v922_v6  ;;  %v932_v6 = vld [vmem:[%s1394_s0 + $0x38] sm:$0xff]  ;;  %s1169_s0 = smov [#allocation6]  }
 0x8b9   :  { %s900_s21 = sshll.u32 %s1169_s0, 4  ;;  %s901_s21 = int_to_ptr.vmem [resolvable:$true] %s900_s21 }
 0x8ba   :  { %s1120_s22 = scalar_lea.vmem %s901_s21, 128  ;;  %p1125_p1 = scmp.lt.s32.totalorder %s901_s21, %s901_s21 }
 0x8bb   :  { %p1121_p0 = scmp.ne.s32.totalorder %s901_s21, %s1120_s22  ;;  %p1126_p2 = scmp.lt.s32.totalorder %s1120_s22, %s1120_s22 }
 0x8bd   :  { %p1127_p3 = por %p1126_p2, %p1125_p1 }
 0x8bf   :  { %p1128_p4 = pnand %p1127_p3, %p1121_p0 }
 0x8c5   :  { %v1091_v7 = vpop.eup %1090 }
 0x8c6   :  { %v430_v8 = vadd.f32 1.0, %v1091_v7 }
 0x8c8   :  { %1092 = vrcp.f32 %v430_v8 }
 0x8d5   :  { %v1093_v9 = vpop.eup %1092 }
 0x8d6   :  { %v433_v12 = vmul.f32 %v1093_v9, %v339_v56 }
 0x928   :  { %v436_v10 = vpop.permute.xlu1 %435 }
 0x929   :  { %v438_v11 = vmul.f32 %v1093_v9, %v436_v10 }
 0x92b   :  { %440 = vrot.lane.b32.xlu0 %v438_v11, %s1167_s6 }
 0x99d   :  { %v441_v13 = vpop.permute.xlu0 %440 }
 0x99e   :  { %v443_v14 = vadd.f32 %v441_v13, %v433_v12 }
 0x9a0   :  { %1094 = vtanh.f32 %v443_v14 }
 0x9ad   :  { %v1095_v15 = vpop.eup %1094 }
 0x9ae   :  { %446 = vrot.lane.b32.xlu1 %v1095_v15, %s1168_s2 }
 0xa20   :  { %v447_v16 = vpop.permute.xlu1 %446 }
 0xa21   :  { %v449_v17 = vmul.f32 %v1093_v9, %v447_v16 }
 0xa23   :  { %451 = vrot.lane.b32.xlu0 %v449_v17, %s1168_s2 }
 0xa95   :  { %v452_v18 = vpop.permute.xlu0 %451 }
 0xa96   :  { %455 = vst.msk [vmem:[#allocation4 + $0x18] sm:$0xff] %vm26_vm0, %v452_v18  ;;  %1028 = vmatmul.mubr.msk.f32.vlgmr.msra.gmra.mxu0 %vm26_vm0, %v452_v18 }
 0xa97   :  { %1042 = vmatpush3.msra.mxu0 %v1206_v0  ;;  %1049 = vmatprep.mubr.msk.f32.mxu0 %vm1165_vm1, %v1164_v1 }
 0xa98   :  { %1043 = vmatprep.subr.mxu0 %v1164_v1 }
 0xa99   :  { %1044 = vmatpush3.msra.mxu0 %v1212_v2 }
 0xa9a   :  { %1045 = vmatprep.subr.mxu0 %v1164_v1 }
 0xa9b   :  { %1046 = vmatpush3.msra.mxu0 %v1226_v4 }
 0xa9c   :  { %1047 = vmatprep.subr.mxu0 %v1164_v1 }
 0xa9d   :  { %1048 = vmatpush3.msra.mxu0 %v1235_v5 }
 0xb56   :  { %v526_v20 = vpop.f32.mrf.mxu0 }
 0xb57   :  { %v530_v21 = vadd.f32 %v923_v19, %v526_v20 }
 0xb58   :  { %v1029_v22 = vpop.f32.mrf.mxu0 }
 0xb59   :  { %539 = vrot.lane.b32.xlu1 %v530_v21, %s1166_s30  ;;  %v925_v23 = vmul.f32 -1.442695, %v530_v21 }
 0xb5b   :  { %1096 = vpow2.f32 %v925_v23 }
 0xb68   :  { %v1097_v24 = vpop.eup %1096 }
 0xb69   :  { %v534_v25 = vadd.f32 1.0, %v1097_v24 }
 0xb6b   :  { %1098 = vrcp.f32 %v534_v25 }
 0xb78   :  { %v1099_v26 = vpop.eup %1098 }
 0xb79   :  { %v537_v29 = vmul.f32 %v1099_v26, %v443_v14 }
 0xbcb   :  { %v540_v27 = vpop.permute.xlu1 %539 }
 0xbcc   :  { %v542_v28 = vmul.f32 %v1099_v26, %v540_v27 }
 0xbce   :  { %544 = vrot.lane.b32.xlu0 %v542_v28, %s1167_s6 }
 0xc40   :  { %v545_v30 = vpop.permute.xlu0 %544 }
 0xc41   :  { %v547_v31 = vadd.f32 %v545_v30, %v537_v29 }
 0xc43   :  { %1100 = vtanh.f32 %v547_v31 }
 0xc50   :  { %v1101_v32 = vpop.eup %1100 }
 0xc51   :  { %550 = vrot.lane.b32.xlu1 %v1101_v32, %s1168_s2 }
 0xcc3   :  { %v551_v33 = vpop.permute.xlu1 %550 }
 0xcc4   :  { %v553_v34 = vmul.f32 %v1099_v26, %v551_v33 }
 0xcc6   :  { %555 = vrot.lane.b32.xlu0 %v553_v34, %s1168_s2 }
 0xd38   :  { %v556_v35 = vpop.permute.xlu0 %555 }
 0xd39   :  { %559 = vst.msk [vmem:[#allocation4 + $0x20] sm:$0xff] %vm26_vm0, %v556_v35  ;;  %1039 = vmatmul.mubr.msk.f32.vlgmr.msra.gmra.mxu1 %vm26_vm0, %v556_v35 }
 0xd3a   :  { %1053 = vmatpush3.msra.mxu1 %v1206_v0  ;;  %1060 = vmatprep.mubr.msk.f32.mxu1 %vm1165_vm1, %v1164_v1 }
 0xd3b   :  { %1054 = vmatprep.subr.mxu1 %v1164_v1 }
 0xd3c   :  { %1055 = vmatpush3.msra.mxu1 %v1212_v2 }
 0xd3d   :  { %1056 = vmatprep.subr.mxu1 %v1164_v1 }
 0xd3e   :  { %1057 = vmatpush3.msra.mxu1 %v1226_v4 }
 0xd3f   :  { %1058 = vmatprep.subr.mxu1 %v1164_v1 }
 0xd40   :  { %1059 = vmatpush3.msra.mxu1 %v1235_v5 }
 0xdf9   :  { %v630_v0 = vpop.f32.mrf.mxu1 }
 0xdfa   :  { %v634_v37 = vadd.f32 %v926_v36, %v630_v0 }
 0xdfb   :  { %v1040_v38 = vpop.f32.mrf.mxu1 }
 0xdfc   :  { %643 = vrot.lane.b32.xlu1 %v634_v37, %s1166_s30  ;;  %v928_v39 = vmul.f32 -1.442695, %v634_v37 }
 0xdfe   :  { %1102 = vpow2.f32 %v928_v39 }
 0xe0b   :  { %v1103_v2 = vpop.eup %1102 }
 0xe0c   :  { %v638_v40 = vadd.f32 1.0, %v1103_v2 }
 0xe0e   :  { %1104 = vrcp.f32 %v638_v40 }
 0xe1b   :  { %v1105_v41 = vpop.eup %1104 }
 0xe1c   :  { %v641_v1 = vmul.f32 %v1105_v41, %v547_v31 }
 0xe6e   :  { %v644_v4 = vpop.permute.xlu1 %643 }
 0xe6f   :  { %v646_v42 = vmul.f32 %v1105_v41, %v644_v4 }
 0xe71   :  { %648 = vrot.lane.b32.xlu0 %v646_v42, %s1167_s6 }
 0xee3   :  { %v649_v5 = vpop.permute.xlu0 %648 }
 0xee4   :  { %v651_v43 = vadd.f32 %v649_v5, %v641_v1 }
 0xee6   :  { %1106 = vtanh.f32 %v651_v43 }
 0xef3   :  { %v1107_v44 = vpop.eup %1106 }
 0xef4   :  { %654 = vrot.lane.b32.xlu1 %v1107_v44, %s1168_s2 }
 0xf66   :  { %v655_v45 = vpop.permute.xlu1 %654 }
 0xf67   :  { %v657_v46 = vmul.f32 %v1105_v41, %v655_v45 }
 0xf69   :  { %659 = vrot.lane.b32.xlu0 %v657_v46, %s1168_s2 }
 0xfdb   :  { %v660_v47 = vpop.permute.xlu0 %659 }
 0xfdc   :  { %663 = vst.msk [vmem:[#allocation4 + $0x28] sm:$0xff] %vm26_vm0, %v660_v47  ;;  %1050 = vmatmul.mubr.msk.f32.vlgmr.msra.gmra.mxu0 %vm26_vm0, %v660_v47 }
0x109c   :  { %v734_v49 = vpop.f32.mrf.mxu0 }
0x109d   :  { %v738_v50 = vadd.f32 %v929_v48, %v734_v49 }
0x109e   :  { %v1051_v51 = vpop.f32.mrf.mxu0 }
0x109f   :  { %747 = vrot.lane.b32.xlu1 %v738_v50, %s1166_s30  ;;  %v931_v52 = vmul.f32 -1.442695, %v738_v50 }
0x10a1   :  { %1108 = vpow2.f32 %v931_v52 }
0x10ae   :  { %v1109_v53 = vpop.eup %1108 }
0x10af   :  { %v742_v54 = vadd.f32 1.0, %v1109_v53 }
0x10b1   :  { %1110 = vrcp.f32 %v742_v54 }
0x10be   :  { %v1111_v55 = vpop.eup %1110 }
0x10bf   :  { %v745_v58 = vmul.f32 %v1111_v55, %v651_v43 }
0x1111   :  { %v748_v56 = vpop.permute.xlu1 %747 }
0x1112   :  { %v750_v57 = vmul.f32 %v1111_v55, %v748_v56 }
0x1114   :  { %752 = vrot.lane.b32.xlu0 %v750_v57, %s1167_s6 }
0x1186   :  { %v753_v59 = vpop.permute.xlu0 %752 }
0x1187   :  { %v755_v60 = vadd.f32 %v753_v59, %v745_v58 }
0x1189   :  { %1112 = vtanh.f32 %v755_v60 }
0x1196   :  { %v1113_v61 = vpop.eup %1112 }
0x1197   :  { %758 = vrot.lane.b32.xlu1 %v1113_v61, %s1168_s2 }
0x1209   :  { %v759_v62 = vpop.permute.xlu1 %758 }
0x120a   :  { %v761_v63 = vmul.f32 %v1111_v55, %v759_v62 }
0x120c   :  { %763 = vrot.lane.b32.xlu0 %v761_v63, %s1168_s2 }
0x127e   :  { %v764_v3 = vpop.permute.xlu0 %763 }
0x127f   :  { %767 = vst.msk [vmem:[#allocation4 + $0x30] sm:$0xff] %vm26_vm0, %v764_v3  ;;  %1061 = vmatmul.mubr.msk.f32.vlgmr.msra.gmra.mxu1 %vm26_vm0, %v764_v3 }
0x133f   :  { %v838_v7 = vpop.f32.mrf.mxu1 }
0x1340   :  { %v842_v8 = vadd.f32 %v932_v6, %v838_v7 }
0x1341   :  { %v1062_v9 = vpop.f32.mrf.mxu1 }
0x1342   :  { %851 = vrot.lane.b32.xlu1 %v842_v8, %s1166_s30  ;;  %v934_v10 = vmul.f32 -1.442695, %v842_v8 }
0x1344   :  { %1114 = vpow2.f32 %v934_v10 }
0x1351   :  { %v1115_v11 = vpop.eup %1114 }
0x1352   :  { %v846_v12 = vadd.f32 1.0, %v1115_v11 }
0x1354   :  { %1116 = vrcp.f32 %v846_v12 }
0x1361   :  { %v1117_v13 = vpop.eup %1116 }
0x1362   :  { %v849_v16 = vmul.f32 %v1117_v13, %v755_v60 }
0x13b4   :  { %v852_v14 = vpop.permute.xlu1 %851 }
0x13b5   :  { %v854_v15 = vmul.f32 %v1117_v13, %v852_v14 }
0x13b7   :  { %856 = vrot.lane.b32.xlu0 %v854_v15, %s1167_s6 }
0x1429   :  { %v857_v17 = vpop.permute.xlu0 %856 }
0x142a   :  { %v859_v18 = vadd.f32 %v857_v17, %v849_v16 }
0x142c   :  { %1118 = vtanh.f32 %v859_v18 }
0x1439   :  { %v1119_v19 = vpop.eup %1118 }
0x143a   :  { %862 = vrot.lane.b32.xlu1 %v1119_v19, %s1168_s2 }
0x143e   :  { %874 = vrot.lane.b32.xlu1 %v859_v18, %s1167_s6 }
0x14ac   :  { %v863_v20 = vpop.permute.xlu1 %862 }
0x14ad   :  { %v865_v21 = vmul.f32 %v1117_v13, %v863_v20 }
0x14af   :  { %867 = vrot.lane.b32.xlu0 %v865_v21, %s1168_s2 }
0x14b0   :  { %v875_v22 = vpop.permute.xlu1 %874 }
0x14b1   :  { %877 = vst.msk [vmem:[#allocation3] sm:$0xff] %vm26_vm0, %v875_v22  ;;  %881 = vst.msk [vmem:[#allocation6] sm:$0xff] %vm26_vm0, %v875_v22 }
0x14b2   :  { %1131 = shalt.err (!%p1128_p4)
}
0x14b3   :  { %903 = dma.vmem_to_hbm [thread:$0]  %s901_s21, 128, %s1399_s5, [#allocation7]  }
0x14b4   :  { %s1170_s25 = smov [#allocation4]  }
0x14b5   :  { %s887_s1 = sshll.u32 %s1170_s25, 4  ;;  %s888_s1 = int_to_ptr.vmem [resolvable:$true] %s887_s1 }
0x14b6   :  { %s1140_s26 = scalar_lea.vmem %s888_s1, 1024  ;;  %p1145_p6 = scmp.lt.s32.totalorder %s888_s1, %s888_s1 }
0x14b7   :  { %p1141_p5 = scmp.ne.s32.totalorder %s888_s1, %s1140_s26  ;;  %p1146_p7 = scmp.lt.s32.totalorder %s1140_s26, %s1140_s26 }
0x14b9   :  { %p1147_p8 = por %p1146_p7, %p1145_p6 }
0x14bb   :  { %p1148_p9 = pnand %p1147_p8, %p1141_p5 }
0x1521   :  { %v868_v23 = vpop.permute.xlu0 %867 }
0x1522   :  { %871 = vst.msk [vmem:[#allocation4 + $0x38] sm:$0xff] %vm26_vm0, %v868_v23  ;;  %872 = vst.msk [vmem:[#allocation2] sm:$0xff] %vm26_vm0, %v868_v23 }
0x1523   :  { %1151 = shalt.err (!%p1148_p9)
}
0x1524   :  { %s1171_s3 = smov 128   ;;  %s1172_s27 = smov 8  }
0x1525   :  { %893 = dma.vmem_to_hbm [thread:$0]  %s888_s1, 1024, %s1398_s4, [#allocation5], %s1171_s3, %s1171_s3, %s1172_s27  }
0x1526   :  { %1160 = dma.done.wait [#allocation5], 1024  }
0x1527   :  { %1161 = vsyncadd [#allocation5], 4294966272 }
0x1528   :  { %1162 = dma.done.wait [#allocation7], 128  }
0x1529   :  { %1163 = vsyncadd [#allocation7], 4294967168 }
0x152a   :  { %910 = vsyncpa [#allocation5], 1 }
0x152b   :  { %911 = vsyncpa [#allocation7], 1 }

</bundles_post_ra>
